<compile_context>
chip_gen: v7x
topology: tpu7x:2x2x1
jax: 0.10.0
libtpu: 0.0.40
codegen_flags: <defaults>
</compile_context>

<pallas_src>
import functools

import jax
import jax.numpy as jnp
from jax import lax
from jax.experimental import pallas as pl
from jax.experimental.pallas import tpu as pltpu


def _addcoords_kernel(x_ref, o_ref, *, H, W):
    # x_ref : (1, C,     TS) VMEM tile (one batch element, one spatial tile)
    # o_ref : (1, C + 3, TS) VMEM tile
    C = x_ref.shape[1]
    TS = x_ref.shape[2]

    # Pass-through of the original channels (pure copy, HBM-roofline work).
    o_ref[:, :C, :] = x_ref[...]

    # Global flattened spatial index of every lane in this tile.
    s_tile = pl.program_id(1)
    flat = lax.broadcasted_iota(jnp.int32, (1, 1, TS), 2) + s_tile * TS
    row = lax.div(flat, W)        # i in [0, H)   (torch.meshgrid 'ij' indexing)
    col = flat - row * W          # j in [0, W)

    row_f = row.astype(jnp.float32)
    col_f = col.astype(jnp.float32)
    xx = row_f / jnp.float32(H - 1) * 2.0 - 1.0
    yy = col_f / jnp.float32(W - 1) * 2.0 - 1.0
    rr = jnp.sqrt((xx - 0.5) ** 2 + (yy - 0.5) ** 2)

    # Single fused store of all three coordinate channels.
    coords = jnp.concatenate([xx, yy, rr], axis=1)          # (1, 3, TS)
    o_ref[:, C:, :] = coords.astype(o_ref.dtype)


def _pick_spatial_tile(S, C, itemsize, budget_bytes=8 << 20):
    """Largest lane-dense (multiple-of-128) tile dividing S under a VMEM budget.

    budget_bytes bounds the single-buffer (in + out) tile footprint; with
    double buffering the pipeline uses ~2x that, well under 64 MiB on v7x.
    """
    if S % 128 != 0:
        return S  # full-extent last dim also satisfies the layout constraint
    per_lane = (2 * C + 3) * itemsize        # in + out bytes per spatial element
    ts = max(128, min(S, (budget_bytes // per_lane) // 128 * 128))
    while S % ts:
        ts -= 128                            # 128 always divides S here
    return ts


def add_coords(x, with_r=True):
    assert with_r, "kernel implements the with_r=True configuration"
    B, C, H, W = x.shape
    assert H > 1 and W > 1, "AddCoords divides by (H-1)/(W-1); needs H,W > 1"
    S = H * W
    TS = _pick_spatial_tile(S, C, jnp.dtype(x.dtype).itemsize)

    x_flat = x.reshape(B, C, S)
    out_flat = pl.pallas_call(
        functools.partial(_addcoords_kernel, H=H, W=W),
        out_shape=jax.ShapeDtypeStruct((B, C + 3, S), x.dtype),
        grid_spec=pltpu.PrefetchScalarGridSpec(
            num_scalar_prefetch=0,
            grid=(B, S // TS),
            in_specs=[pl.BlockSpec((1, C, TS), lambda b, s: (b, 0, s))],
            out_specs=pl.BlockSpec((1, C + 3, TS), lambda b, s: (b, 0, s)),
        ),
        compiler_params=pltpu.CompilerParams(
            dimension_semantics=("parallel", "parallel")),
    )(x_flat)
    return out_flat.reshape(B, C + 3, H, W)


def add_coords_ref(x):
    # pure-JAX reference mirroring the PyTorch forward (with_r=True)
    B, C, H, W = x.shape
    ii = jnp.arange(H, dtype=x.dtype)[:, None]
    jj = jnp.arange(W, dtype=x.dtype)[None, :]
    xx = (ii / (H - 1) * 2 - 1) * jnp.ones((H, W), x.dtype)
    yy = (jj / (W - 1) * 2 - 1) * jnp.ones((H, W), x.dtype)
    xx_b = jnp.broadcast_to(xx[None, None], (B, 1, H, W))
    yy_b = jnp.broadcast_to(yy[None, None], (B, 1, H, W))
    rr = jnp.sqrt((xx_b - 0.5) ** 2 + (yy_b - 0.5) ** 2)
    return jnp.concatenate([x, xx_b, yy_b, rr], axis=1)


if __name__ == "__main__":
    key = jax.random.PRNGKey(0)
    B, C, H, W = 2, 4, 16, 16
    x = jax.random.normal(key, (B, C, H, W), dtype=jnp.float32)

    out = add_coords(x)
    out = jax.block_until_ready(out)

    ref = add_coords_ref(x)
    assert out.shape == (B, C + 3, H, W), out.shape
    assert jnp.allclose(out, ref, atol=1e-5, rtol=1e-5), "mismatch vs reference"

    print("KERNEL_OK")
</pallas_src>

<mosaic_0001>
module attributes {stable_mosaic.version = 11 : i64} {
  func.func @_addcoords_kernel(%arg0: i32, %arg1: i32, %arg2: memref<1x4x256xf32, #tpu.memory_space<vmem>>, %arg3: memref<1x7x256xf32, #tpu.memory_space<vmem>>) attributes {dimension_semantics = [#tpu.dimension_semantics<parallel>, #tpu.dimension_semantics<parallel>], iteration_bounds = array<i64: 2, 1>, scalar_prefetch = 0 : i64, scratch_operands = 0 : i64, tpu.core_type = #tpu.core_type<tc>, window_params = [{transform_indices = @transform_0, window_bounds = array<i64: 1, 4, 256>}, {transform_indices = @transform_1, window_bounds = array<i64: 1, 7, 256>}]} {
    %c0 = arith.constant 0 : index
    %c0_0 = arith.constant 0 : index
    %c0_1 = arith.constant 0 : index
    %0 = vector.load %arg2[%c0, %c0_0, %c0_1] : memref<1x4x256xf32, #tpu.memory_space<vmem>>, vector<1x4x256xf32>
    %c0_2 = arith.constant 0 : index
    %c0_3 = arith.constant 0 : index
    %c0_4 = arith.constant 0 : index
    %1 = vector.load %arg3[%c0_2, %c0_3, %c0_4] : memref<1x7x256xf32, #tpu.memory_space<vmem>>, vector<1x4x256xf32>
    tpu.vector_store %arg3[%c0_2, %c0_3, %c0_4], %0 {strides = array<i32>} : memref<1x7x256xf32, #tpu.memory_space<vmem>>, vector<1x4x256xf32>,
    %2 = tpu.iota {dimensions = array<i32: 2>} : vector<1x1x256xi32>
    %c256_i32 = arith.constant 256 : i32
    %3 = arith.muli %arg1, %c256_i32 : i32
    %4 = vector.broadcast %3 : i32 to vector<1x1x256xi32>
    %5 = arith.addi %2, %4 : vector<1x1x256xi32>
    %c16_i32 = arith.constant 16 : i32
    %6 = vector.broadcast %c16_i32 : i32 to vector<1x1x256xi32>
    %7 = arith.divsi %5, %6 : vector<1x1x256xi32>
    %c16_i32_5 = arith.constant 16 : i32
    %8 = vector.broadcast %c16_i32_5 : i32 to vector<1x1x256xi32>
    %9 = arith.muli %7, %8 : vector<1x1x256xi32>
    %10 = arith.subi %5, %9 : vector<1x1x256xi32>
    %11 = arith.sitofp %7 : vector<1x1x256xi32> to vector<1x1x256xf32>
    %12 = arith.sitofp %10 : vector<1x1x256xi32> to vector<1x1x256xf32>
    %cst = arith.constant 1.500000e+01 : f32
    %13 = vector.broadcast %cst : f32 to vector<1x1x256xf32>
    %14 = arith.divf %11, %13 : vector<1x1x256xf32>
    %cst_6 = arith.constant 2.000000e+00 : f32
    %15 = vector.broadcast %cst_6 : f32 to vector<1x1x256xf32>
    %16 = arith.mulf %14, %15 : vector<1x1x256xf32>
    %cst_7 = arith.constant 1.000000e+00 : f32
    %17 = vector.broadcast %cst_7 : f32 to vector<1x1x256xf32>
    %18 = arith.subf %16, %17 : vector<1x1x256xf32>
    %cst_8 = arith.constant 1.500000e+01 : f32
    %19 = vector.broadcast %cst_8 : f32 to vector<1x1x256xf32>
    %20 = arith.divf %12, %19 : vector<1x1x256xf32>
    %cst_9 = arith.constant 2.000000e+00 : f32
    %21 = vector.broadcast %cst_9 : f32 to vector<1x1x256xf32>
    %22 = arith.mulf %20, %21 : vector<1x1x256xf32>
    %cst_10 = arith.constant 1.000000e+00 : f32
    %23 = vector.broadcast %cst_10 : f32 to vector<1x1x256xf32>
    %24 = arith.subf %22, %23 : vector<1x1x256xf32>
    %cst_11 = arith.constant 5.000000e-01 : f32
    %25 = vector.broadcast %cst_11 : f32 to vector<1x1x256xf32>
    %26 = arith.subf %18, %25 : vector<1x1x256xf32>
    %27 = arith.mulf %26, %26 : vector<1x1x256xf32>
    %cst_12 = arith.constant 5.000000e-01 : f32
    %28 = vector.broadcast %cst_12 : f32 to vector<1x1x256xf32>
    %29 = arith.subf %24, %28 : vector<1x1x256xf32>
    %30 = arith.mulf %29, %29 : vector<1x1x256xf32>
    %31 = arith.addf %27, %30 : vector<1x1x256xf32>
    %32 = math.sqrt %31 : vector<1x1x256xf32>
    %33 = tpu.concatenate %18, %24, %32 in 1 : vector<1x1x256xf32>, vector<1x1x256xf32>, vector<1x1x256xf32> -> vector<1x3x256xf32>
    %c0_13 = arith.constant 0 : index
    %c4 = arith.constant 4 : index
    %c0_14 = arith.constant 0 : index
    %34 = vector.load %arg3[%c0_13, %c4, %c0_14] : memref<1x7x256xf32, #tpu.memory_space<vmem>>, vector<1x3x256xf32>
    tpu.vector_store %arg3[%c0_13, %c4, %c0_14], %33 {strides = array<i32>} : memref<1x7x256xf32, #tpu.memory_space<vmem>>, vector<1x3x256xf32>,
    return
  }
  func.func @transform_0(%arg0: i32, %arg1: i32) -> (i32, i32, i32) {
    %c0_i32 = arith.constant 0 : i32
    %c0_i32_0 = arith.constant 0 : i32
    return %arg0, %c0_i32, %arg1 : i32, i32, i32
  }
  func.func @transform_1(%arg0: i32, %arg1: i32) -> (i32, i32, i32) {
    %c0_i32 = arith.constant 0 : i32
    %c0_i32_0 = arith.constant 0 : i32
    return %arg0, %c0_i32, %arg1 : i32, i32, i32
  }
}

</mosaic_0001>

<bundles_post_ra>
// kernel: tpu_custom_call.1
= control target key start
LH: loop header
LB: loop body
LE: loop exit
PB: predicated region body
PF: predicated region fallthrough
CT: control target
= control target key end

     0   :  { %6 = vsyncpa [#allocation3], 0  ;;  %s653_s0 = inlined_call_operand.hbm [shape: f32[2,4,256], index: 0, kind: input, shape index: {}]   ;;  %s654_s1 = inlined_call_operand.vmem [shape: f32[2,7,256], index: 1, kind: output, shape index: {}]  }
   0x1   :  { %8 = vsyncpa [#allocation3 + $0x1], 0  ;;  %s520_s6 = smov 0   ;;  %s522_s7 = smov 0  }
   0x2   :  { %s524_s8 = smov 0   ;;  %s526_s9 = smov 0  }
   0x3   :  { %s528_s10 = smov 0   ;;  %s530_s11 = smov 0  }
   0x4 LB: > { %s344_s12 = sadd.s32 4294967295, %s507_s11   ;;  %s26_s13 = sadd.s32 1, %s503_s10  ;;  %s507_s11 = sphi %s530_s11, %s14_s11   ;;  %s503_s10 = sphi %s528_s10, %s664_s10   ;;  %s499_s9 = sphi %s526_s9, %s663_s9   ;;  %s495_s8 = sphi %s524_s8, %s662_s8   ;;  %s491_s7 = sphi %s522_s7, %s661_s7   ;;  %s487_s6 = sphi %s520_s6, %s660_s6  }
   0x5   : > { %p28_p0 = scmp.ge.s32.totalorder %s26_s13, 2  ;;  %s35_s14 = sadd.s32 1, %s495_s8 }
   0x6   : > { %p42_p1 = scmp.ne.s32.totalorder %s495_s8, %s491_s7  ;;  %p43_p2 = scmp.eq.s32.totalorder %s507_s11, 0 }
   0x7   : > { %s666_s13 = smov (%p28_p0, %s26_s13), 0  ;;  %p48_p4 = scmp.ne.s32.totalorder %s491_s7, %s487_s6 }
   0x8   : > { %p556_p3 = por %p43_p2, %p42_p1  ;;  %s30_s16 = ssub.s32 %s503_s10, %s666_s13 }
   0x9   : > { %p49_p5 = scmp.eq.s32.totalorder %s344_s12, 0  ;;  %p33_p6 = scmp.eq.s32.totalorder %s30_s16, 0 }
   0xa   : > { %p373_p8 = scmp.lt.s32.totalorder %s507_s11, 2  ;;  %s100_s19 = sand.u32 1, %s495_s8  }
   0xb   : > { %p563_p7 = por %p49_p5, %p48_p4  ;;  %s365_s20 = sshll.u32 %s503_s10, 7 }
   0xc   : > { %s569_s18 = scalar_select %p33_p6, %s495_s8, %s35_s14  }
   0xd   : > { %s348_s21 = sshll.u32 %s100_s19, 3  ;;  %s576_s24 = scalar_lea.hbm %s653_s0, %s365_s20 }
   0xe   : > { %s104_s25 = scalar_lea.vmem [#allocation2], %s348_s21  ;;  %p580_p9 = pnand %p373_p8, %p556_p3 }
   0xf   : > { %s114_s26 = sshll.u32 %s104_s25, 4  ;;  %s101_s28 = scalar_lea.sflag [#allocation3], %s100_s19  ;;  %s584_s26 = int_to_ptr.vmem [resolvable:$true] %s114_s26 }
  0x10   : > { %s427_s29 = scalar_lea.hbm %s576_s24, 128  ;;  %p429_p13 = pneg %p580_p9 }
  0x11   : > { %p428_p12 = scmp.ne.s32.totalorder %s576_s24, %s427_s29  ;;  %s432_s3 = scalar_lea.hbm %s653_s0, 256 }
  0x12   : > { %p433_p2 = scmp.lt.u32.totalorder %s576_s24, %s653_s0  ;;  %p434_p3 = scmp.lt.u32.totalorder %s432_s3, %s427_s29 }
  0x13   : > { %p430_p0 = pnand %p429_p13, %p428_p12  ;;  %p436_p5 = scmp.lt.u32.totalorder %s427_s29, %s576_s24 }
  0x14   : > { %p435_p4 = por %p434_p3, %p433_p2 }
  0x15   : > { %p431_p1 = pneg %p430_p0 }
  0x16   : > { %p437_p6 = por %p436_p5, %p435_p4 }
  0x18   : > { %p438_p8 = pnand %p437_p6, %p431_p1 }
  0x1a   : > { %441 = shalt.err (!%p438_p8)
}
  0x1b   : > { %s442_s6 = scalar_lea.vmem %s584_s26, 128  ;;  %s509_s12 = smov [#allocation2]  }
  0x1c   : > { %p443_p12 = scmp.ne.s32.totalorder %s584_s26, %s442_s6  ;;  %s447_s14 = sshll.u32 %s509_s12, 4  ;;  %s448_s14 = int_to_ptr.vmem [resolvable:$false] %s447_s14 }
  0x1d   : > { %s449_s15 = scalar_lea.vmem %s448_s14, 256  ;;  %p450_p11 = scmp.lt.s32.totalorder %s584_s26, %s448_s14 }
  0x1e   : > { %p445_p0 = pnand %p443_p12, %p429_p13  ;;  %p451_p2 = scmp.lt.s32.totalorder %s449_s15, %s442_s6 }
  0x20   : > { %p446_p10 = pneg %p445_p0  ;;  %p452_p3 = por %p451_p2, %p450_p11 }
  0x22   : > { %p453_p4 = pnand %p452_p3, %p446_p10 }
  0x24   : > { %456 = shalt.err (!%p453_p4)
}
  0x25   : > { %372 = dma.hbm_to_vmem [thread:$0]  (!%p580_p9), %s576_s24, 128, %s584_s26, %s101_s28  }
  0x26   : > { %p658_p1 = scmp.lt.s32.totalorder %s507_s11, 3  ;;  %p659_p5 = scmp.ge.s32.totalorder %s507_s11, 1 }
  0x28   : > { %p120_p13 = pnand %p659_p5, %p658_p1 }
  0x29   : > { %s125_s16 = sand.u32 (!%p120_p13), 1, %s491_s7  }
  0x2a   : > { %123 = sbr.rel (%p120_p13) target bundleno = 95 (0x5f), region = 24  ;;  %s352_s19 = sshll.u32 (!%p120_p13), %s125_s16, 3 }
  0x2b   : > { %s126_s20 = scalar_lea.sflag (!%p120_p13), [#allocation3], %s125_s16  ;;  %s129_s21 = scalar_lea.vmem (!%p120_p13), [#allocation2], %s352_s19 }
  0x31   : > { %482 = dma.done.wait (%p563_p7), %s126_s20, 128  }
  0x32   : > { %484 = vsyncadd (%p563_p7), %s126_s20, 4294967168  ;;  %p154_p10 = scmp.lt.s32.totalorder %s499_s9, 1  ;;  %v169_v0 = vlaneseq  ;;  %v163_v7 = vld [vmem:[%s129_s21] sm:$0xff]  ;;  %vm235_vm0 = vcmask 1040384   ;;  %vm238_vm3 = vcmask 1041408  }
  0x33   : > { %v165_v8 = vcombine.high %v163_v7, %v163_v7 }
  0x34   : > { %s668_s9 = smov (!%p154_p10, %s499_s9), 1  ;;  %v170_v1 = vand.u32 127, %v169_v0 }
  0x35   : > { %s366_s22 = sshll.u32 %s668_s9, 4 }
  0x36   : > { %v179_v2 = vshrl.u32 %v170_v1, 4  ;;  %v171_v3 = vadd.s32 128, %v170_v1  ;;  %s627_s25 = scalar_lea.vmem %s654_s1, %s366_s22 }
  0x37   : > { %167 = vst [vmem:[%s627_s25] sm:$0xf] %v163_v7  ;;  %168 = vst [vmem:[%s627_s25 + $0x8] sm:$0xf] %v165_v8 }
  0x38   : > { %v190_v4 = vmul.u32 16, %v179_v2  ;;  %v194_v5 = vcvt.s32.f32 %v179_v2  ;;  %v186_v6 = vshrl.u32 %v171_v3, 4 }
  0x3a   : > { %v192_v9 = vsub.s32 %v170_v1, %v190_v4  ;;  %v199_v10 = vmul.f32 0.06666667, %v194_v5  ;;  %v191_v11 = vmul.u32 16, %v186_v6  ;;  %v195_v12 = vcvt.s32.f32 %v186_v6 }
  0x3c   : > { %v196_v13 = vcvt.s32.f32 %v192_v9  ;;  %v201_v14 = vmul.f32 2.0, %v199_v10  ;;  %v193_v15 = vsub.s32 %v171_v3, %v191_v11  ;;  %v200_v16 = vmul.f32 0.06666667, %v195_v12 }
  0x3e   : > { %v355_v17 = vadd.f32 -1.0, %v201_v14  ;;  %v205_v18 = vmul.f32 0.06666667, %v196_v13  ;;  %v197_v19 = vcvt.s32.f32 %v193_v15  ;;  %v202_v20 = vmul.f32 2.0, %v200_v16 }
  0x40   : > { %v207_v21 = vmul.f32 2.0, %v205_v18  ;;  %v359_v22 = vadd.f32 -0.5, %v355_v17  ;;  %v206_v23 = vmul.f32 0.06666667, %v197_v19  ;;  %v356_v24 = vadd.f32 -1.0, %v202_v20 }
  0x42   : > { %v357_v25 = vadd.f32 -1.0, %v207_v21  ;;  %v208_v26 = vmul.f32 2.0, %v206_v23  ;;  %v360_v27 = vadd.f32 -0.5, %v356_v24  ;;  %v213_v28 = vmul.f32 %v359_v22, %v359_v22 }
  0x44   : > { %v361_v29 = vadd.f32 -0.5, %v357_v25  ;;  %v358_v30 = vadd.f32 -1.0, %v208_v26  ;;  %v214_v33 = vmul.f32 %v360_v27, %v360_v27  ;;  %v236_v40 = vsel %vm235_vm0, %v355_v17, %v357_v25 }
  0x46   : > { %v217_v31 = vmul.f32 %v361_v29, %v361_v29  ;;  %v362_v32 = vadd.f32 -0.5, %v358_v30  ;;  %v237_v47 = vsel %vm235_vm0, %v356_v24, %v358_v30 }
  0x48   : > { %v219_v34 = vadd.f32 %v217_v31, %v213_v28  ;;  %v218_v35 = vmul.f32 %v362_v32, %v362_v32 }
  0x4a   : > { %423 = vrsqrt.f32 %v219_v34  ;;  %v220_v36 = vadd.f32 %v218_v35, %v214_v33  ;;  %vm223_vm1 = vcmp.eq.f32.partialorder %v219_v34, inf  ;;  %v226_v38 = vand.u32 2147483648, %v219_v34 }
  0x4b   : > { %vm225_vm2 = vcmp.eq.f32.partialorder %v219_v34, 0.0 }
  0x4c   : > { %425 = vrsqrt.f32 %v220_v36  ;;  %vm230_vm4 = vcmp.eq.f32.partialorder %v220_v36, inf  ;;  %v233_v43 = vand.u32 2147483648, %v220_v36  ;;  %vm232_vm5 = vcmp.eq.f32.partialorder %v220_v36, 0.0 }
  0x54   : > { %v424_v37 = vpop.eup %423 }
  0x55   : > { %v222_v39 = vmul.f32 %v424_v37, %v219_v34 }
  0x56   : > { %v426_v41 = vpop.eup %425 }
  0x57   : > { %v224_v42 = vsel %vm223_vm1, %v219_v34, %v222_v39  ;;  %v229_v45 = vmul.f32 %v426_v41, %v220_v36 }
  0x58   : > { %v227_v44 = vsel %vm225_vm2, %v226_v38, %v224_v42 }
  0x59   : > { %v239_v46 = vsel %vm238_vm3, %v236_v40, %v227_v44  ;;  %v231_v49 = vsel %vm230_vm4, %v220_v36, %v229_v45 }
  0x5a   : > { %v243_v48 = vrot.slane %v239_v46, 4  ;;  %v234_v50 = vsel %vm232_vm5, %v233_v43, %v231_v49 }
  0x5b   : > { %v240_v51 = vsel %vm238_vm3, %v237_v47, %v234_v50 }
  0x5c   : > { %247 = vst [vmem:[%s627_s25] sm:$0x70] %v243_v48  ;;  %v244_v52 = vrot.slane %v240_v51, 4 }
  0x5e   : > { %248 = vst [vmem:[%s627_s25 + $0x8] sm:$0x70] %v244_v52 }
  0x5f PF: > { %s14_s11 = sadd.s32 1, %s507_s11   ;;  %s660_s6 = smov %s491_s7 }
  0x60   : > { %p11_p7 = scmp.ge.s32.totalorder %s14_s11, 4   ;;  %s661_s7 = smov %s495_s8 }
  0x61   : > { %s662_s8 = smov %s569_s18  ;;  %s663_s9 = smov %s503_s10 }
  0x62   : > { %s664_s10 = smov %s666_s13  ;;  %13 = sbr.rel (!%p11_p7) target bundleno = 4 (0x4), region = 64 }
  0x69   :  { %279 = vsyncpa [#allocation3], 1 }
  0x6a   :  { %281 = vsyncpa [#allocation3 + $0x1], 1 }

</bundles_post_ra>
